<compile_context>
chip_gen: v5e
topology: v5e:2x2
jax: 0.10.0
libtpu: 0.0.40
codegen_flags: <defaults>
</compile_context>

<pallas_src>
import numpy as np
import jax
import jax.numpy as jnp
from jax.experimental import pallas as pl
from jax.experimental.pallas import tpu as pltpu

_VMEM = pl.BlockSpec(memory_space=pltpu.MemorySpace.VMEM)


def _round_up(x, m):
    return ((x + m - 1) // m) * m


# ----------------------------- Pallas kernels ------------------------------

def _prototype_kernel(fts_ref, lbl_ref, proto_ref):
    """proto[c] = mean of feature rows whose label == c (zeros if class empty)."""
    C = proto_ref.shape[0]
    N = fts_ref.shape[0]
    labels = lbl_ref[...]                                            # (1, N) int32
    class_ids = jax.lax.broadcasted_iota(jnp.int32, (C, N), 0)       # (C, N)
    onehot = (class_ids == labels).astype(jnp.float32)               # (C, N)
    sums = jnp.dot(onehot, fts_ref[...],
                   preferred_element_type=jnp.float32)               # (C, D)
    counts = jnp.dot(onehot, jnp.ones((N, 1), jnp.float32),
                     preferred_element_type=jnp.float32)             # (C, 1) on MXU
    inv = pl.reciprocal(jnp.maximum(counts, 1.0), approx=True)       # EUP slot
    proto_ref[...] = sums * inv


def prototype_pallas(fts, labels, class_num):
    """Pallas version of MGCN_TPN_Classifier_union_gai.getPrototype."""
    fts = jnp.asarray(fts, jnp.float32)
    labels = jnp.asarray(labels, jnp.int32)
    n = min(fts.shape[0], labels.shape[0])          # mirrors `length = min(...)`
    fts = fts[:n]
    labels2d = labels[:n].reshape(1, n)
    return pl.pallas_call(
        _prototype_kernel,
        out_shape=jax.ShapeDtypeStruct((class_num, fts.shape[1]), jnp.float32),
        in_specs=[_VMEM, _VMEM],
        out_specs=_VMEM,
    )(fts, labels2d)


def _proto_euclid_kernel(fts_ref, lbl_ref, q_ref, logits_ref):
    """Fused getPrototype + euclidean_metric.

    proto[c]     = mean of fts rows with label c (zeros if empty class)
    logits[i, c] = -||q[i] - proto[c]||^2  via  2*q@p.T - ||q||^2 - ||p||^2 (MXU)
    """
    N, D = fts_ref.shape
    C = logits_ref.shape[1]
    labels = lbl_ref[...]                                            # (1, N)
    class_ids = jax.lax.broadcasted_iota(jnp.int32, (C, N), 0)       # (C, N)
    onehot = (class_ids == labels).astype(jnp.float32)               # (C, N)
    sums = jnp.dot(onehot, fts_ref[...],
                   preferred_element_type=jnp.float32)               # (C, D)
    counts = jnp.dot(onehot, jnp.ones((N, 1), jnp.float32),
                     preferred_element_type=jnp.float32)             # (C, 1)
    proto = sums * pl.reciprocal(jnp.maximum(counts, 1.0), approx=True)

    q = q_ref[...]                                                   # (Nq, D)
    cross = jax.lax.dot_general(q, proto, (((1,), (1,)), ((), ())),
                                preferred_element_type=jnp.float32)  # (Nq, C)
    qsq = jnp.sum(q * q, axis=1, keepdims=True)                      # (Nq, 1)
    psq = jax.lax.dot_general(jnp.ones((1, D), jnp.float32), proto * proto,
                              (((1,), (1,)), ((), ())),
                              preferred_element_type=jnp.float32)    # (1, C)
    logits_ref[...] = 2.0 * cross - qsq - psq


def proto_euclid_pallas(fts, labels, query_fts, class_num):
    """Single pallas_call: prototypes from (fts, labels) + euclidean logits for
    query_fts against those prototypes. Returns (Nq, class_num) f32."""
    fts = jnp.asarray(fts, jnp.float32)
    labels = jnp.asarray(labels, jnp.int32)
    query_fts = jnp.asarray(query_fts, jnp.float32)
    n = min(fts.shape[0], labels.shape[0])
    fts = fts[:n]
    labels2d = labels[:n].reshape(1, n)
    # TODO(synk): at realistic N/Nq/D add BlockSpec tiling over Nq (parallel)
    # and the N reduction so the kernel fits v7x's 64 MiB VMEM; whole-array
    # VMEM residency is fine at these few-shot shapes.
    return pl.pallas_call(
        _proto_euclid_kernel,
        out_shape=jax.ShapeDtypeStruct((query_fts.shape[0], class_num),
                                       jnp.float32),
        in_specs=[_VMEM, _VMEM, _VMEM],
        out_specs=_VMEM,
    )(fts, labels2d, query_fts)


def _mask_gather_kernel(idx_ref, logits_t_ref, out_ref):
    """out[:, p] = logits_t[:, idx[p]]; sentinel idx == L yields zeros.

    Lane-dense: the pixel tile sits on lanes of the output (C, tile) block, so
    stores are full-width vst instead of masked C=3-wide partial stores.
    """
    L = logits_t_ref.shape[1]
    T = idx_ref.shape[1]
    sp_ids = jax.lax.broadcasted_iota(jnp.int32, (L, T), 0)          # (L, T)
    onehot = (sp_ids == idx_ref[...]).astype(jnp.float32)            # (L, T)
    out_ref[...] = jnp.dot(logits_t_ref[...], onehot,
                           preferred_element_type=jnp.float32)       # (C, T)


def mask_gather_pallas(idx_padded_np, logits, tile):
    """Gather per-pixel logits via one-hot matmul.

    idx_padded_np: host numpy (1, Mp) int32, sentinel == L in the padding.
    Returns (C, Mp) f32 (transposed / lane-dense); caller slices + transposes.
    """
    logits = jnp.asarray(logits, jnp.float32)
    L, C = logits.shape
    logits_t = jnp.transpose(logits)                 # tiny (C, L) host-side XLA op
    Mp = idx_padded_np.shape[1]
    assert Mp % tile == 0 and tile % 128 == 0
    idx = jnp.asarray(idx_padded_np, jnp.int32)
    return pl.pallas_call(
        _mask_gather_kernel,
        out_shape=jax.ShapeDtypeStruct((C, Mp), jnp.float32),
        grid=(Mp // tile,),
        in_specs=[pl.BlockSpec((1, tile), lambda i: (0, i)),
                  pl.BlockSpec((C, L), lambda i: (0, 0))],
        out_specs=pl.BlockSpec((C, tile), lambda i: (0, i)),
        compiler_params=pltpu.CompilerParams(
            dimension_semantics=("parallel",)),
    )(idx, logits_t)


# ------------------------ module-level glue / wrapper -----------------------

def mgcn_tpn_standin(features, label_shot, label_query, class_num):
    # TODO(synk): models_RS.MGCN_LabelPropagation_A_TPN_Proto_gai is an external,
    # unprovided sub-module; replaced by a deterministic prototype / euclidean
    # label propagator with a fixed even/odd predicted-vs-unpredicted split.
    shot_num = label_shot.shape[0]
    shot_fts = features[:shot_num]
    query_fts = features[shot_num:]
    predict_p = proto_euclid_pallas(shot_fts, label_shot, query_fts, class_num)
    pred_label = jnp.argmax(predict_p, axis=1).astype(jnp.int32)
    q_idx = np.arange(query_fts.shape[0])
    index_predicted = q_idx[q_idx % 2 == 0].astype(np.int32)
    index_no_predicted = q_idx[q_idx % 2 == 1].astype(np.int32)
    return None, predict_p, pred_label, None, None, index_no_predicted, index_predicted


class MGCNTPNClassifierUnionGai:
    """JAX/Pallas re-implementation of MGCN_TPN_Classifier_union_gai.forward."""

    def __init__(self, way, shot):
        self.way = way
        self.shot = shot

    def label_to_mask(self, logits, segments, class_num):
        segments = np.asarray(segments)
        num_segments = segments.shape[0]
        L = int(logits.shape[0])
        M = num_segments * self.size * self.size
        # Pixel tile: lane-dense multiple of 128, up to 1024 per grid step.
        tile = min(1024, _round_up(M, 128))
        Mp = _round_up(M, tile)
        # Host-side enumeration of unique superpixel ids (faithful to the
        # PyTorch nested loops); sentinel index L maps to an all-zero column.
        pix_idx = np.full((num_segments, self.size, self.size), L, dtype=np.int32)
        index = 0
        for i in range(num_segments):
            temp = np.unique(segments[i])
            for j in range(len(temp)):
                if index < L:
                    pix_idx[i][segments[i] == temp[j]] = index
                    index += 1
        idx_padded = np.full((1, Mp), L, dtype=np.int32)     # sentinel padding
        idx_padded[0, :M] = pix_idx.reshape(-1)
        out_t = mask_gather_pallas(idx_padded, logits, tile)          # (C, Mp)
        out = jnp.transpose(out_t[:, :M])                             # (M, C)
        return out.reshape(num_segments, self.size, self.size, class_num)

    def getPrototype(self, fg_fts, fg_label, class_num):
        return prototype_pallas(fg_fts, fg_label, class_num)

    def forward(self, feature_superpixel, label_superpixel_shot,
                label_superpixel_query, slic_npy, class_num):
        self.size = slic_npy.shape[1]
        img_segments = np.asarray(slic_npy)

        (_, predict_p, pred_label, _, _,
         index_no_pred, index_pred) = mgcn_tpn_standin(
            feature_superpixel, label_superpixel_shot,
            label_superpixel_query, class_num)

        used_label = jnp.concatenate(
            [jnp.asarray(label_superpixel_shot, jnp.int32), pred_label], axis=0)
        shot_num = label_superpixel_shot.shape[0]
        shot_list = np.arange(shot_num, dtype=np.int32)

        index_pred = np.asarray(index_pred)
        index_no_pred = np.asarray(index_no_pred)

        if index_pred.ndim == 0:
            index_union_predicted = shot_list
        else:
            index_union_predicted = np.concatenate(
                [index_pred + shot_num, shot_list]).astype(np.int32)

        if index_no_pred.ndim != 0 and index_no_pred.size > 0:
            index_union_unpredicted = (index_no_pred + shot_num).astype(np.int32)
            # Fused prototype + euclidean metric: one pallas_call.
            logits = proto_euclid_pallas(
                feature_superpixel[index_union_predicted],
                used_label[index_union_predicted],
                feature_superpixel[index_union_unpredicted, :],
                class_num)
            predict_p_out = jnp.zeros_like(predict_p)
            predict_p_out = predict_p_out.at[index_pred].set(predict_p[index_pred])
            predict_p_out = predict_p_out.at[index_no_pred].set(logits)
        else:
            predict_p_out = predict_p

        output = self.label_to_mask(predict_p_out,
                                    img_segments[self.shot:], class_num)
        return output, predict_p_out


# ---------------------------------- main ------------------------------------

if __name__ == "__main__":
    key = jax.random.PRNGKey(0)
    class_num = way = 3
    shot = 1                 # number of shot images
    num_query_imgs = 2
    size = 16                # SLIC map spatial size
    n_sp = 8                 # superpixels per image
    D = 32                   # superpixel feature dim

    shot_sp = shot * n_sp
    query_sp = num_query_imgs * n_sp
    N = shot_sp + query_sp

    kf, kl, kq = jax.random.split(key, 3)
    feature_superpixel = jax.random.normal(kf, (N, D), dtype=jnp.float32)
    label_superpixel_shot = jax.random.randint(kl, (shot_sp,), 0, class_num,
                                               dtype=jnp.int32)
    label_superpixel_query = jax.random.randint(kq, (query_sp,), 0, class_num,
                                                dtype=jnp.int32)

    # SLIC maps: each 16x16 image split into 8 horizontal bands -> ids 0..7.
    seg_one = np.repeat(np.arange(n_sp, dtype=np.int32), size // n_sp)[:, None]
    seg_one = np.ascontiguousarray(np.broadcast_to(seg_one, (size, size)))
    slic_npy = np.stack([seg_one] * (shot + num_query_imgs), axis=0)

    model = MGCNTPNClassifierUnionGai(way=way, shot=shot)
    output, predict_p_out = model.forward(
        feature_superpixel, label_superpixel_shot, label_superpixel_query,
        slic_npy, class_num)

    jax.block_until_ready((output, predict_p_out))
    assert output.shape == (num_query_imgs, size, size, class_num)
    assert predict_p_out.shape == (query_sp, class_num)
    assert bool(jnp.all(jnp.isfinite(output)))
    print("KERNEL_OK")
</pallas_src>

<mosaic_0001>
module attributes {stable_mosaic.version = 11 : i64} {
  func.func @_proto_euclid_kernel(%arg0: memref<8x32xf32, #tpu.memory_space<vmem>>, %arg1: memref<1x8xi32, #tpu.memory_space<vmem>>, %arg2: memref<16x32xf32, #tpu.memory_space<vmem>>, %arg3: memref<16x3xf32, #tpu.memory_space<vmem>>) attributes {dimension_semantics = [], scalar_prefetch = 0 : i64, scratch_operands = 0 : i64, tpu.core_type = #tpu.core_type<tc>} {
    %c0 = arith.constant 0 : index
    %c0_0 = arith.constant 0 : index
    %0 = vector.load %arg1[%c0, %c0_0] : memref<1x8xi32, #tpu.memory_space<vmem>>, vector<1x8xi32>
    %1 = tpu.iota {dimensions = array<i32: 0>} : vector<3x8xi32>
    %2 = vector.broadcast %0 : vector<1x8xi32> to vector<3x8xi32>
    %3 = arith.cmpi eq, %1, %2 : vector<3x8xi32>
    %4 = arith.extui %3 : vector<3x8xi1> to vector<3x8xi32>
    %5 = arith.sitofp %4 : vector<3x8xi32> to vector<3x8xf32>
    %c0_1 = arith.constant 0 : index
    %c0_2 = arith.constant 0 : index
    %6 = vector.load %arg0[%c0_1, %c0_2] : memref<8x32xf32, #tpu.memory_space<vmem>>, vector<8x32xf32>
    %cst = arith.constant dense<0.000000e+00> : vector<3x32xf32>
    %7 = tpu.matmul %5, %6, %cst {dimension_numbers = #tpu.dot_dimension_numbers<[1], [0], [0], [1], [0, 0, 1, 1], [], []>} : vector<3x8xf32>, vector<8x32xf32>, vector<3x32xf32> -> vector<3x32xf32>
    %cst_3 = arith.constant 1.000000e+00 : f32
    %8 = vector.broadcast %cst_3 : f32 to vector<8x1xf32>
    %cst_4 = arith.constant dense<0.000000e+00> : vector<3x1xf32>
    %9 = tpu.matmul %5, %8, %cst_4 {dimension_numbers = #tpu.dot_dimension_numbers<[1], [0], [0], [1], [0, 0, 1, 1], [], []>} : vector<3x8xf32>, vector<8x1xf32>, vector<3x1xf32> -> vector<3x1xf32>
    %cst_5 = arith.constant 1.000000e+00 : f32
    %10 = vector.broadcast %cst_5 : f32 to vector<3x1xf32>
    %11 = arith.maximumf %9, %10 : vector<3x1xf32>
    %12 = tpu.reciprocal %11 {approx = true} : vector<3x1xf32> -> vector<3x1xf32>
    %13 = vector.broadcast %12 : vector<3x1xf32> to vector<3x32xf32>
    %14 = arith.mulf %7, %13 : vector<3x32xf32>
    %c0_6 = arith.constant 0 : index
    %c0_7 = arith.constant 0 : index
    %15 = vector.load %arg2[%c0_6, %c0_7] : memref<16x32xf32, #tpu.memory_space<vmem>>, vector<16x32xf32>
    %cst_8 = arith.constant dense<0.000000e+00> : vector<16x3xf32>
    %16 = tpu.matmul %15, %14, %cst_8 {dimension_numbers = #tpu.dot_dimension_numbers<[1], [1], [0], [0], [0, 0, 1, 0], [], []>} : vector<16x32xf32>, vector<3x32xf32>, vector<16x3xf32> -> vector<16x3xf32>
    %17 = arith.mulf %15, %15 : vector<16x32xf32>
    %cst_9 = arith.constant dense<0.000000e+00> : vector<16xf32>
    %18 = vector.multi_reduction <add>, %17, %cst_9 [1] : vector<16x32xf32> to vector<16xf32>
    %19 = vector.shape_cast %18 : vector<16xf32> to vector<16x1xf32>
    %cst_10 = arith.constant 1.000000e+00 : f32
    %20 = vector.broadcast %cst_10 : f32 to vector<1x32xf32>
    %21 = arith.mulf %14, %14 : vector<3x32xf32>
    %cst_11 = arith.constant dense<0.000000e+00> : vector<1x3xf32>
    %22 = tpu.matmul %20, %21, %cst_11 {dimension_numbers = #tpu.dot_dimension_numbers<[1], [1], [0], [0], [0, 0, 1, 0], [], []>} : vector<1x32xf32>, vector<3x32xf32>, vector<1x3xf32> -> vector<1x3xf32>
    %cst_12 = arith.constant 2.000000e+00 : f32
    %23 = vector.broadcast %cst_12 : f32 to vector<16x3xf32>
    %24 = arith.mulf %23, %16 : vector<16x3xf32>
    %25 = vector.broadcast %19 : vector<16x1xf32> to vector<16x3xf32>
    %26 = arith.subf %24, %25 : vector<16x3xf32>
    %27 = vector.broadcast %22 : vector<1x3xf32> to vector<16x3xf32>
    %28 = arith.subf %26, %27 : vector<16x3xf32>
    %c0_13 = arith.constant 0 : index
    %c0_14 = arith.constant 0 : index
    %29 = vector.load %arg3[%c0_13, %c0_14] : memref<16x3xf32, #tpu.memory_space<vmem>>, vector<16x3xf32>
    tpu.vector_store %arg3[%c0_13, %c0_14], %28 {strides = array<i32>} : memref<16x3xf32, #tpu.memory_space<vmem>>, vector<16x3xf32>,
    return
  }
}

</mosaic_0001>

<bundles_post_ra>
// kernel: tpu_custom_call.1
= control target key start
LH: loop header
LB: loop body
LE: loop exit
PB: predicated region body
PF: predicated region fallthrough
CT: control target
= control target key end

     0   :  { %8 = vsyncpa [#allocation3], 0  ;;  %s343_s0 = inlined_call_operand.hbm [shape: f32[8,32], index: 0, kind: input, shape index: {}]   ;;  %s344_s1 = inlined_call_operand.hbm [shape: s32[1,8], index: 1, kind: input, shape index: {}]   ;;  %s345_s2 = inlined_call_operand.hbm [shape: f32[16,32], index: 2, kind: input, shape index: {}]   ;;  %s346_s3 = inlined_call_operand.vmem [shape: f32[16,3], index: 3, kind: output, shape index: {}]  }
   0x1   :  { %9 = vsyncpa [#allocation5], 0  ;;  %s26_s14 = sshll.u32 %s344_s1, 4  ;;  %s300_s15 = smov [#allocation4]   ;;  %s27_s14 = int_to_ptr.hbm [resolvable:$true] %s26_s14 }
   0x2   :  { %s28_s16 = sshll.u32 %s300_s15, 4  ;;  %s15_s19 = sshll.u32 %s343_s0, 4  ;;  %s29_s16 = int_to_ptr.vmem [resolvable:$true] %s28_s16  ;;  %s16_s19 = int_to_ptr.hbm [resolvable:$true] %s15_s19 }
   0x3   :  { %31 = dma.hbm_to_vmem [thread:$0]  %s27_s14, 16, %s29_s16, [#allocation5]  }
   0x4   :  { %s301_s20 = smov [#allocation2]   ;;  %s36_s24 = sshll.u32 %s345_s2, 4  ;;  %s37_s24 = int_to_ptr.hbm [resolvable:$true] %s36_s24 }
   0x5   :  { %s17_s21 = sshll.u32 %s301_s20, 4  ;;  %s302_s1 = smov [#allocation6]   ;;  %s18_s21 = int_to_ptr.vmem [resolvable:$true] %s17_s21 }
   0x6   :  { %20 = dma.hbm_to_vmem [thread:$0]  %s16_s19, 128, %s18_s21, [#allocation3]  }
   0x7   :  { %s38_s25 = sshll.u32 %s302_s1, 4  ;;  %s303_s26 = smov 128   ;;  %s39_s25 = int_to_ptr.vmem [resolvable:$true] %s38_s25 }
   0x8   :  { %s304_s27 = smov 8  }
   0x9   :  { %44 = dma.hbm_to_vmem [thread:$0]  %s37_s24, 256, %s39_s25, [#allocation5], %s303_s26, %s303_s26, %s304_s27  }
   0xa   :  { %296 = dma.done.wait [#allocation3], 128  }
   0xb   :  { %297 = vsyncadd [#allocation3], 4294967168 }
   0xc   :  { %298 = dma.done.wait [#allocation5], 272  }
   0xd   :  { %299 = vsyncadd [#allocation5], 4294967024  ;;  %v305_v0 = vmov 1.0   ;;  %v58_v1 = vlaneseq  ;;  %v221_v3 = vld [vmem:[#allocation4] ss:$0 sm:$0xff]  ;;  %v64_v4 = vld [vmem:[#allocation2] sm:$0xff] }
   0xe   :  { %104 = vmatpush.msra.mxu1 %v305_v0  ;;  %vm65_vm0 = vcmask 64512   ;;  %84 = vmatpush.msra.mxu0 %v64_v4  ;;  %v306_v5 = vmov 0.0   ;;  %v307_v7 = vmov 0   ;;  %v118_v11 = vld [vmem:[#allocation6 + $0x8] sm:$0xff]  ;;  %v117_v12 = vld [vmem:[#allocation6] sm:$0xff]  ;;  %vm119_vm2 = vcmask 261120  }
   0xf   :  { %v59_v2 = vshrl.u32 %v58_v1, 7  ;;  %220 = vset.pattern.permute.xlu0 %v307_v7  ;;  %v153_v13 = vmul.f32 %v118_v11, %v118_v11  ;;  %v152_v14 = vmul.f32 %v117_v12, %v117_v12  ;;  %vm194_vm3 = vcmask 23552  }
  0x11   :  { %vm61_vm1 = vcmp.eq.s32.totalorder %v59_v2, %v221_v3  ;;  %v157_v15 = vsel %vm119_vm2, %v153_v13, 0.0  ;;  %v154_v16 = vsel %vm119_vm2, %v152_v14, 0.0 }
  0x12   :  { %v203_v6 = vsel %vm61_vm1, 1.0, %v306_v5  ;;  %158 = vadd.xlane.f32.xlu1 %v157_v15 }
  0x13   :  { %205 = vmatmul.msk.f32.vlgmr.msra.gmra.mxu1 %vm65_vm0, %v203_v6  ;;  %204 = vmatmul.msk.f32.vlgmr.msra.gmra.mxu0 %vm65_vm0, %v203_v6 }
  0x85   :  { %v159_v25 = vpop.xlane.xlu1 %158 }
  0x90   :  { %v106_v8 = vpop.f32.mrf.mxu1  ;;  %v86_v17 = vpop.f32.mrf.mxu0 }
  0x91   :  { %v109_v9 = vmax.f32 %v106_v8, 1.0 }
  0x93   :  { %222 = vrcp.f32 %v109_v9 }
  0x99   :  { %v223_v10 = vpop.eup %222 }
  0x9a   :  { %113 = vperm.xlu0 %220, %v223_v10  }
  0xc4   :  { %155 = vadd.xlane.f32.xlu0 %v154_v16 }
 0x10c   :  { %v114_v18 = vpop.permute.xlu0 %113 }
 0x10d   :  { %v116_v19 = vmul.f32 %v114_v18, %v86_v17 }
 0x10f   :  { %206 = vmatpush.xpose.msk.msrb.mxu0 %vm119_vm2, %v116_v19  ;;  %211 = vmatpush.xpose.msk.msra.mxu2 %vm119_vm2, %v116_v19  ;;  %v160_v20 = vmul.f32 %v116_v19, %v116_v19 }
 0x111   :  { %209 = vmatpush.xpose.msk.msra.mxu3 %vm119_vm2, %v160_v20 }
 0x112   :  { %208 = vmatmul.msk.f32.vlgmr.msra.gmra.mxu2 %vm119_vm2, %v118_v11  ;;  %207 = vmatmul.msk.f32.vlgmr.msrb.gmra.mxu0 %vm119_vm2, %v117_v12 }
 0x114   :  { %210 = vmatmul.msk.f32.vlgmr.msra.gmra.mxu3 %vm119_vm2, %v305_v0 }
 0x137   :  { %v156_v23 = vpop.xlane.xlu0 %155 }
 0x18f   :  { %v146_v21 = vpop.f32.mrf.mxu0 }
 0x190   :  { %v187_v22 = vmul.f32 2.0, %v146_v21 }
 0x192   :  { %v189_v27 = vsub.f32 %v187_v22, %v156_v23 }
 0x195   :  { %v149_v24 = vpop.f32.mrf.mxu2 }
 0x196   :  { %v188_v26 = vmul.f32 2.0, %v149_v24 }
 0x197   :  { %v184_v28 = vpop.f32.mrf.mxu3 }
 0x198   :  { %v190_v29 = vsub.f32 %v188_v26, %v159_v25  ;;  %v191_v30 = vperm.slane %v184_v28, 0 }
 0x19a   :  { %v192_v31 = vsub.f32 %v189_v27, %v191_v30  ;;  %v193_v32 = vsub.f32 %v190_v29, %v191_v30 }
 0x19c   :  { %195 = vst.msk [vmem:[%s346_s3] sm:$0xff] %vm194_vm3, %v192_v31 }
 0x19d   :  { %196 = vst.msk [vmem:[%s346_s3 + $0x8] sm:$0xff] %vm194_vm3, %v193_v32 }
 0x19e   :  { %201 = vsyncpa [#allocation3], 1 }
 0x19f   :  { %202 = vsyncpa [#allocation5], 1 }

</bundles_post_ra>
